<compile_context>
chip_gen: v7x
topology: tpu7x:2x2x1
jax: 0.10.0
libtpu: 0.0.40
codegen_flags: <defaults>
</compile_context>

<pallas_src>
import functools

import jax
import jax.numpy as jnp
from jax.experimental import pallas as pl
from jax.experimental.pallas import tpu as pltpu


def _round_up(v, m):
    return (v + m - 1) // m * m


def _vmem_capacity_bytes():
    """Physical VMEM per TensorCore; conservative 64 MiB (v7x) fallback."""
    try:
        cap = pltpu.get_tpu_info().vmem_capacity_bytes
        if cap:
            return int(cap)
    except Exception:
        pass
    return 64 << 20


# ----------------------------- Pallas kernel -------------------------------

def moe_expert_kernel(mask_ref, x_ref, g_ref, w1_ref, b1_ref, w2_ref, b2_ref,
                      o_ref, *, weights_resident):
    """Grid = (token_tiles, n_experts).  Expert axis is a reduction.

    mask_ref : SMEM (num_tiles * n_experts,) int32 -- 1 iff any token in tile i
               is routed to expert e (derived from top-k indices; scalar prefetch).
    x_ref    : (tn, d_in_p)  bf16
    g_ref    : (tn, 1)       f32   gate column for this expert
    w1_ref   : resident: (E, d_in_p, d_hid_p) bf16  (DMA'd once, indexed by e)
               streamed: (d_in_p, d_hid_p)    bf16  (one expert per grid step)
    b1_ref   : (1, d_hid_p)  f32
    w2_ref   : resident: (E, d_hid_p, d_out_p) bf16 / streamed: (d_hid_p, d_out_p)
    b2_ref   : (1, d_out_p)  f32
    o_ref    : (tn, d_out_p) f32   accumulated in-place across experts
    """
    i = pl.program_id(0)
    e = pl.program_id(1)
    n_experts = pl.num_programs(1)

    @pl.when(e == 0)
    def _():
        o_ref[...] = jnp.zeros_like(o_ref)

    # Skip experts no token in this tile was routed to (saves both matmuls;
    # with resident weights there is no wasted weight DMA on skipped steps).
    @pl.when(mask_ref[i * n_experts + e] > 0)
    def _():
        w1 = w1_ref[e] if weights_resident else w1_ref[...]
        w2 = w2_ref[e] if weights_resident else w2_ref[...]
        x = x_ref[...]                                              # bf16
        h = jnp.dot(x, w1, preferred_element_type=jnp.float32)
        h = jnp.maximum(h + b1_ref[...], 0.0)                       # f32
        y = jnp.dot(h.astype(jnp.bfloat16), w2,
                    preferred_element_type=jnp.float32) + b2_ref[...]
        o_ref[...] += g_ref[...] * y                                # gated accumulate


# ------------------------------- wrapper ------------------------------------

@functools.partial(jax.jit, static_argnames=("top_k", "token_tile"))
def moe_forward(x, wr, br, w1, b1, w2, b2, *, top_k, token_tile=512):
    """x: (B, S, d_input) float32.  Returns (B, S, d_output) float32."""
    assert token_tile % 8 == 0
    B, S, d_input = x.shape
    n_experts, _, d_hidden = w1.shape
    d_output = w2.shape[-1]
    N = B * S
    x_flat = x.reshape(N, d_input).astype(jnp.float32)

    # ---- router + top-k + softmax (tiny glue, plain JAX, f32) ----
    logits = x_flat @ wr + br                               # (N, E)
    topk_logits, topk_idx = jax.lax.top_k(logits, top_k)    # (N, k)
    topk_gates = jax.nn.softmax(topk_logits, axis=1)        # (N, k)
    # Dense (N, E) gates via scatter (no O(N*k*E) one-hot materialization).
    rows = jnp.arange(N)[:, None]
    dense_gates = jnp.zeros((N, n_experts), jnp.float32)
    dense_gates = dense_gates.at[rows, topk_idx].add(topk_gates)

    # ---- padding: token axis to tile multiple, feature axes to 128 ----
    tn = token_tile if N >= token_tile else _round_up(N, 8)
    N_pad = _round_up(N, tn)
    d_in_p = _round_up(d_input, 128)
    d_hid_p = _round_up(d_hidden, 128)
    d_out_p = _round_up(d_output, 128)
    num_tiles = N_pad // tn

    x_p = jnp.zeros((N_pad, d_in_p), jnp.bfloat16)
    x_p = x_p.at[:N, :d_input].set(x_flat.astype(jnp.bfloat16))

    gates_p = jnp.zeros((N_pad, n_experts), jnp.float32).at[:N].set(dense_gates)
    gates_pe = gates_p.T.reshape(n_experts, N_pad, 1)        # (E, N_pad, 1)

    w1_p = jnp.zeros((n_experts, d_in_p, d_hid_p), jnp.bfloat16)
    w1_p = w1_p.at[:, :d_input, :d_hidden].set(w1.astype(jnp.bfloat16))
    b1_p = jnp.zeros((n_experts, 1, d_hid_p), jnp.float32)
    b1_p = b1_p.at[:, 0, :d_hidden].set(b1)
    w2_p = jnp.zeros((n_experts, d_hid_p, d_out_p), jnp.bfloat16)
    w2_p = w2_p.at[:, :d_hidden, :d_output].set(w2.astype(jnp.bfloat16))
    b2_p = jnp.zeros((n_experts, 1, d_out_p), jnp.float32)
    b2_p = b2_p.at[:, 0, :d_output].set(b2)

    # Per-(tile, expert) activity mask from the routing *indices* (so an
    # expert selected with an exact-zero gate is still handled; benign either
    # way). Padded tokens never contribute -> fully padded tiles are skipped.
    token_tile_id = jnp.arange(N) // tn
    tile_mask = jnp.zeros((num_tiles, n_experts), jnp.int32)
    tile_mask = tile_mask.at[token_tile_id[:, None], topk_idx].set(1)
    tile_mask = tile_mask.reshape(-1)                        # flat 1-D for SMEM

    # ---- explicit VMEM accounting (review): decide weight residency ----
    bytes_w12_all = n_experts * (d_in_p * d_hid_p + d_hid_p * d_out_p) * 2
    bytes_w12_one = bytes_w12_all // n_experts
    bytes_b_blk = (d_hid_p + d_out_p) * 4
    bytes_x_blk = tn * d_in_p * 2
    bytes_g_blk = tn * 4
    bytes_o_blk = tn * d_out_p * 4
    headroom = 4 << 20                                       # compiler scratch

    cap = int(0.85 * _vmem_capacity_bytes())                 # v7x-safe ceiling
    # 2x = double-buffered pipeline blocks; resident weights counted 2x as well
    # (conservative) so the decision never overcommits physical VMEM.
    need_resident = (2 * bytes_w12_all
                     + 2 * (bytes_x_blk + bytes_g_blk + bytes_b_blk)
                     + 2 * bytes_o_blk + headroom)
    need_stream = (2 * bytes_w12_one
                   + 2 * (bytes_x_blk + bytes_g_blk + bytes_b_blk)
                   + 2 * bytes_o_blk + headroom)
    weights_resident = bool(need_resident <= cap)
    vmem_limit = int(min(max(need_resident if weights_resident else need_stream,
                             32 << 20), cap))

    if weights_resident:
        # Full-array weight blocks, constant block index -> DMA'd exactly once
        # for the whole kernel; expert selected in-kernel via w_ref[e].
        w1_spec = pl.BlockSpec((n_experts, d_in_p, d_hid_p),
                               lambda i, e, m: (0, 0, 0))
        w2_spec = pl.BlockSpec((n_experts, d_hid_p, d_out_p),
                               lambda i, e, m: (0, 0, 0))
    else:
        # TODO(synk): for experts too large for VMEM residency, add a
        # hidden-dim grid axis (tile d_hidden) and/or restructure as a grouped
        # GEMM with scalar-prefetched group offsets instead of this dense
        # per-expert weight streaming.
        w1_spec = pl.BlockSpec((None, d_in_p, d_hid_p),
                               lambda i, e, m: (e, 0, 0))
        w2_spec = pl.BlockSpec((None, d_hid_p, d_out_p),
                               lambda i, e, m: (e, 0, 0))

    grid_spec = pltpu.PrefetchScalarGridSpec(
        num_scalar_prefetch=1,
        grid=(num_tiles, n_experts),
        in_specs=[
            pl.BlockSpec((tn, d_in_p),        lambda i, e, m: (i, 0)),
            pl.BlockSpec((None, tn, 1),       lambda i, e, m: (e, i, 0)),
            w1_spec,
            pl.BlockSpec((None, 1, d_hid_p),  lambda i, e, m: (e, 0, 0)),
            w2_spec,
            pl.BlockSpec((None, 1, d_out_p),  lambda i, e, m: (e, 0, 0)),
        ],
        out_specs=pl.BlockSpec((tn, d_out_p), lambda i, e, m: (i, 0)),
    )

    kernel = functools.partial(moe_expert_kernel,
                               weights_resident=weights_resident)

    out_p = pl.pallas_call(
        kernel,
        out_shape=jax.ShapeDtypeStruct((N_pad, d_out_p), jnp.float32),
        grid_spec=grid_spec,
        compiler_params=pltpu.CompilerParams(
            # Token tiles independent; expert axis is the sequential reduction.
            # TODO(synk): try pltpu.CORE_PARALLEL on axis 0 for v7x's 2 TCs.
            dimension_semantics=("parallel", "arbitrary"),
            vmem_limit_bytes=vmem_limit),
    )(tile_mask, x_p, gates_pe, w1_p, b1_p, w2_p, b2_p)

    return out_p[:N, :d_output].reshape(B, S, d_output)


# ------------------------- pure-JAX references ------------------------------

def moe_reference_f32(x, wr, br, w1, b1, w2, b2, *, top_k):
    B, S, d_input = x.shape
    d_output = w2.shape[-1]
    N = B * S
    xf = x.reshape(N, d_input)
    logits = xf @ wr + br
    tl, ti = jax.lax.top_k(logits, top_k)
    g = jax.nn.softmax(tl, axis=1)
    out = jnp.zeros((N, d_output), jnp.float32)
    for i in range(top_k):
        idx = ti[:, i]
        h = jnp.maximum(jnp.einsum('nd,ndh->nh', xf, w1[idx]) + b1[idx], 0.0)
        y = jnp.einsum('nh,nho->no', h, w2[idx]) + b2[idx]
        out = out + g[:, i:i + 1] * y
    return out.reshape(B, S, d_output)


def moe_reference_bf16(x, wr, br, w1, b1, w2, b2, *, top_k):
    """Matches the kernel's bf16-input / f32-accumulate matmul precision."""
    B, S, d_input = x.shape
    d_output = w2.shape[-1]
    N = B * S
    xf = x.reshape(N, d_input)
    logits = xf @ wr + br                      # routing stays f32 (same as kernel)
    tl, ti = jax.lax.top_k(logits, top_k)
    g = jax.nn.softmax(tl, axis=1)
    xb = xf.astype(jnp.bfloat16)
    w1b = w1.astype(jnp.bfloat16)
    w2b = w2.astype(jnp.bfloat16)
    out = jnp.zeros((N, d_output), jnp.float32)
    for i in range(top_k):
        idx = ti[:, i]
        h = jnp.einsum('nd,ndh->nh', xb, w1b[idx],
                       preferred_element_type=jnp.float32) + b1[idx]
        h = jnp.maximum(h, 0.0)
        y = jnp.einsum('nh,nho->no', h.astype(jnp.bfloat16), w2b[idx],
                       preferred_element_type=jnp.float32) + b2[idx]
        out = out + g[:, i:i + 1] * y
    return out.reshape(B, S, d_output)


# --------------------------------- main -------------------------------------

if __name__ == "__main__":
    # Small shapes consistent with the module's forward.
    B, S = 2, 8
    d_input, d_hidden, d_output = 32, 64, 32
    n_experts, top_k = 4, 2

    key = jax.random.PRNGKey(0)
    ks = jax.random.split(key, 8)

    # Deterministic synthetic parameters (stored directly in (in, out) layout).
    x  = jax.random.normal(ks[0], (B, S, d_input), jnp.float32)
    wr = jax.random.normal(ks[1], (d_input, n_experts), jnp.float32) * 0.1
    br = jax.random.normal(ks[2], (n_experts,), jnp.float32) * 0.1
    w1 = jax.random.normal(ks[3], (n_experts, d_input, d_hidden), jnp.float32) * 0.1
    b1 = jax.random.normal(ks[4], (n_experts, d_hidden), jnp.float32) * 0.1
    w2 = jax.random.normal(ks[5], (n_experts, d_hidden, d_output), jnp.float32) * 0.1
    b2 = jax.random.normal(ks[6], (n_experts, d_output), jnp.float32) * 0.1

    out = moe_forward(x, wr, br, w1, b1, w2, b2, top_k=top_k)
    out = jax.block_until_ready(out)
    assert out.shape == (B, S, d_output)

    # Tight check against a precision-matched (bf16-input) reference.
    ref_bf16 = moe_reference_bf16(x, wr, br, w1, b1, w2, b2, top_k=top_k)
    assert jnp.allclose(out, ref_bf16, rtol=1e-3, atol=1e-3), \
        "mismatch vs bf16-matched reference"

    # Loose check against the full-f32 reference (bf16 matmul rounding only).
    ref_f32 = moe_reference_f32(x, wr, br, w1, b1, w2, b2, top_k=top_k)
    assert jnp.allclose(out, ref_f32, rtol=3e-2, atol=3e-2), \
        "mismatch vs f32 reference"

    print("KERNEL_OK")
</pallas_src>

<mosaic_0001>
module attributes {stable_mosaic.version = 11 : i64} {
  func.func private @main(%arg0: i32) attributes {dimension_semantics = [#tpu.dimension_semantics<core_parallel>], iteration_bounds = array<i64: 2>, tpu.core_type = #tpu.core_type<sc_scalar_subcore>, window_params = []} {
    return
  }
}

module attributes {stable_mosaic.version = 11 : i64} {
  func.func private @main(%arg0: i32) attributes {dimension_semantics = [#tpu.dimension_semantics<core_parallel>], iteration_bounds = array<i64: 2>, tpu.core_type = #tpu.core_type<sc_scalar_subcore>, window_params = []} {
    return
  }
}

module attributes {stable_mosaic.version = 11 : i64} {
  func.func @moe_expert_kernel(%arg0: i32, %arg1: i32, %arg2: memref<4xi32, #tpu.memory_space<smem>>, %arg3: memref<16x128xbf16, #tpu.memory_space<vmem>>, %arg4: memref<1x16x1xf32, #tpu.memory_space<vmem>>, %arg5: memref<4x128x128xbf16, #tpu.memory_space<vmem>>, %arg6: memref<1x1x128xf32, #tpu.memory_space<vmem>>, %arg7: memref<4x128x128xbf16, #tpu.memory_space<vmem>>, %arg8: memref<1x1x128xf32, #tpu.memory_space<vmem>>, %arg9: memref<16x128xf32, #tpu.memory_space<vmem>>) attributes {dimension_semantics = [#tpu.dimension_semantics<parallel>, #tpu.dimension_semantics<arbitrary>], iteration_bounds = array<i64: 1, 4>, scalar_prefetch = 1 : i64, scratch_operands = 0 : i64, tpu.core_type = #tpu.core_type<tc>, window_params = [{transform_indices = @transform_0, window_bounds = array<i64: 16, 128>}, {transform_indices = @transform_1, window_bounds = array<i64: 1, 16, 1>}, {pipeline_mode = #tpu.pipeline_mode<synchronous>, transform_indices = @transform_2, window_bounds = array<i64: 4, 128, 128>}, {transform_indices = @transform_3, window_bounds = array<i64: 1, 1, 128>}, {pipeline_mode = #tpu.pipeline_mode<synchronous>, transform_indices = @transform_4, window_bounds = array<i64: 4, 128, 128>}, {transform_indices = @transform_5, window_bounds = array<i64: 1, 1, 128>}, {transform_indices = @transform_6, window_bounds = array<i64: 16, 128>}]} {
    %c0_i32 = arith.constant 0 : i32
    %0 = arith.cmpi eq, %arg1, %c0_i32 : i32
    %1 = arith.extui %0 : i1 to i32
    %c0_i32_0 = arith.constant 0 : i32
    %2 = arith.cmpi ne, %1, %c0_i32_0 : i32
    scf.if %2 {
      %cst = arith.constant 0.000000e+00 : f32
      %10 = vector.broadcast %cst : f32 to vector<16x128xf32>
      %c0 = arith.constant 0 : index
      %c0_3 = arith.constant 0 : index
      %11 = vector.load %arg9[%c0, %c0_3] : memref<16x128xf32, #tpu.memory_space<vmem>>, vector<16x128xf32>
      tpu.vector_store %arg9[%c0, %c0_3], %10 {strides = array<i32>} : memref<16x128xf32, #tpu.memory_space<vmem>>, vector<16x128xf32>,
    } else {
    }
    %c4_i32 = arith.constant 4 : i32
    %3 = arith.muli %arg0, %c4_i32 : i32
    %4 = arith.addi %3, %arg1 : i32
    %5 = arith.index_cast %4 : i32 to index
    %6 = memref.load %arg2[%5] : memref<4xi32, #tpu.memory_space<smem>>
    %c0_i32_1 = arith.constant 0 : i32
    %7 = arith.cmpi sgt, %6, %c0_i32_1 : i32
    %8 = arith.extui %7 : i1 to i32
    %c0_i32_2 = arith.constant 0 : i32
    %9 = arith.cmpi ne, %8, %c0_i32_2 : i32
    scf.if %9 {
      %10 = arith.index_cast %arg1 : i32 to index
      %c0 = arith.constant 0 : index
      %c0_3 = arith.constant 0 : index
      %11 = vector.load %arg5[%10, %c0, %c0_3] : memref<4x128x128xbf16, #tpu.memory_space<vmem>>, vector<1x128x128xbf16>
      %12 = vector.shape_cast %11 : vector<1x128x128xbf16> to vector<128x128xbf16>
      %13 = arith.index_cast %arg1 : i32 to index
      %c0_4 = arith.constant 0 : index
      %c0_5 = arith.constant 0 : index
      %14 = vector.load %arg7[%13, %c0_4, %c0_5] : memref<4x128x128xbf16, #tpu.memory_space<vmem>>, vector<1x128x128xbf16>
      %15 = vector.shape_cast %14 : vector<1x128x128xbf16> to vector<128x128xbf16>
      %c0_6 = arith.constant 0 : index
      %c0_7 = arith.constant 0 : index
      %16 = vector.load %arg3[%c0_6, %c0_7] : memref<16x128xbf16, #tpu.memory_space<vmem>>, vector<16x128xbf16>
      %cst = arith.constant dense<0.000000e+00> : vector<16x128xf32>
      %17 = tpu.matmul %16, %12, %cst {dimension_numbers = #tpu.dot_dimension_numbers<[1], [0], [0], [1], [0, 0, 1, 1], [], []>} : vector<16x128xbf16>, vector<128x128xbf16>, vector<16x128xf32> -> vector<16x128xf32>
      %c0_8 = arith.constant 0 : index
      %c0_9 = arith.constant 0 : index
      %c0_10 = arith.constant 0 : index
      %18 = vector.load %arg6[%c0_8, %c0_9, %c0_10] : memref<1x1x128xf32, #tpu.memory_space<vmem>>, vector<1x1x128xf32>
      %19 = vector.shape_cast %18 : vector<1x1x128xf32> to vector<1x128xf32>
      %20 = vector.broadcast %19 : vector<1x128xf32> to vector<16x128xf32>
      %21 = arith.addf %17, %20 : vector<16x128xf32>
      %cst_11 = arith.constant 0.000000e+00 : f32
      %22 = vector.broadcast %cst_11 : f32 to vector<16x128xf32>
      %23 = arith.maximumf %21, %22 : vector<16x128xf32>
      %24 = arith.truncf %23 : vector<16x128xf32> to vector<16x128xbf16>
      %cst_12 = arith.constant dense<0.000000e+00> : vector<16x128xf32>
      %25 = tpu.matmul %24, %15, %cst_12 {dimension_numbers = #tpu.dot_dimension_numbers<[1], [0], [0], [1], [0, 0, 1, 1], [], []>} : vector<16x128xbf16>, vector<128x128xbf16>, vector<16x128xf32> -> vector<16x128xf32>
      %c0_13 = arith.constant 0 : index
      %c0_14 = arith.constant 0 : index
      %c0_15 = arith.constant 0 : index
      %26 = vector.load %arg8[%c0_13, %c0_14, %c0_15] : memref<1x1x128xf32, #tpu.memory_space<vmem>>, vector<1x1x128xf32>
      %27 = vector.shape_cast %26 : vector<1x1x128xf32> to vector<1x128xf32>
      %28 = vector.broadcast %27 : vector<1x128xf32> to vector<16x128xf32>
      %29 = arith.addf %25, %28 : vector<16x128xf32>
      %c0_16 = arith.constant 0 : index
      %c0_17 = arith.constant 0 : index
      %30 = vector.load %arg9[%c0_16, %c0_17] : memref<16x128xf32, #tpu.memory_space<vmem>>, vector<16x128xf32>
      %c0_18 = arith.constant 0 : index
      %c0_19 = arith.constant 0 : index
      %c0_20 = arith.constant 0 : index
      %31 = vector.load %arg4[%c0_18, %c0_19, %c0_20] : memref<1x16x1xf32, #tpu.memory_space<vmem>>, vector<1x16x1xf32>
      %32 = vector.shape_cast %31 : vector<1x16x1xf32> to vector<16x1xf32>
      %33 = vector.broadcast %32 : vector<16x1xf32> to vector<16x128xf32>
      %34 = arith.mulf %33, %29 : vector<16x128xf32>
      %35 = arith.addf %30, %34 : vector<16x128xf32>
      %c0_21 = arith.constant 0 : index
      %c0_22 = arith.constant 0 : index
      %36 = vector.load %arg9[%c0_21, %c0_22] : memref<16x128xf32, #tpu.memory_space<vmem>>, vector<16x128xf32>
      tpu.vector_store %arg9[%c0_21, %c0_22], %35 {strides = array<i32>} : memref<16x128xf32, #tpu.memory_space<vmem>>, vector<16x128xf32>,
    } else {
    }
    return
  }
  func.func @transform_0(%arg0: i32, %arg1: i32, %arg2: memref<4xi32, #tpu.memory_space<smem>>) -> (i32, i32) {
    %c0_i32 = arith.constant 0 : i32
    %c0_i32_0 = arith.constant 0 : i32
    return %arg0, %c0_i32 : i32, i32
  }
  func.func @transform_1(%arg0: i32, %arg1: i32, %arg2: memref<4xi32, #tpu.memory_space<smem>>) -> (i32, i32, i32) {
    %c0_i32 = arith.constant 0 : i32
    %c0_i32_0 = arith.constant 0 : i32
    return %arg1, %arg0, %c0_i32 : i32, i32, i32
  }
  func.func @transform_2(%arg0: i32, %arg1: i32, %arg2: memref<4xi32, #tpu.memory_space<smem>>) -> (i32, i32, i32) {
    %c0_i32 = arith.constant 0 : i32
    %c0_i32_0 = arith.constant 0 : i32
    %c0_i32_1 = arith.constant 0 : i32
    %c0_i32_2 = arith.constant 0 : i32
    return %c0_i32, %c0_i32_0, %c0_i32_1 : i32, i32, i32
  }
  func.func @transform_3(%arg0: i32, %arg1: i32, %arg2: memref<4xi32, #tpu.memory_space<smem>>) -> (i32, i32, i32) {
    %c0_i32 = arith.constant 0 : i32
    %c0_i32_0 = arith.constant 0 : i32
    %c0_i32_1 = arith.constant 0 : i32
    return %arg1, %c0_i32, %c0_i32_0 : i32, i32, i32
  }
  func.func @transform_4(%arg0: i32, %arg1: i32, %arg2: memref<4xi32, #tpu.memory_space<smem>>) -> (i32, i32, i32) {
    %c0_i32 = arith.constant 0 : i32
    %c0_i32_0 = arith.constant 0 : i32
    %c0_i32_1 = arith.constant 0 : i32
    %c0_i32_2 = arith.constant 0 : i32
    return %c0_i32, %c0_i32_0, %c0_i32_1 : i32, i32, i32
  }
  func.func @transform_5(%arg0: i32, %arg1: i32, %arg2: memref<4xi32, #tpu.memory_space<smem>>) -> (i32, i32, i32) {
    %c0_i32 = arith.constant 0 : i32
    %c0_i32_0 = arith.constant 0 : i32
    %c0_i32_1 = arith.constant 0 : i32
    return %arg1, %c0_i32, %c0_i32_0 : i32, i32, i32
  }
  func.func @transform_6(%arg0: i32, %arg1: i32, %arg2: memref<4xi32, #tpu.memory_space<smem>>) -> (i32, i32) {
    %c0_i32 = arith.constant 0 : i32
    %c0_i32_0 = arith.constant 0 : i32
    return %arg0, %c0_i32 : i32, i32
  }
}

</mosaic_0001>

<bundles_post_ra>
// kernel: moe_forward.1
= control target key start
LH: loop header
LB: loop body
LE: loop exit
PB: predicated region body
PF: predicated region fallthrough
CT: control target
= control target key end

     0   :  { %s1055_s0 = inlined_call_operand.vmem [shape: s32[4], index: 0, kind: input, shape index: {}]   ;;  %s1056_s1 = inlined_call_operand.vmem [shape: bf16[16,128], index: 1, kind: input, shape index: {}]   ;;  %s1057_s2 = inlined_call_operand.vmem [shape: f32[4,16,1], index: 2, kind: input, shape index: {}]   ;;  %s1058_s3 = inlined_call_operand.vmem [shape: bf16[4,128,128], index: 3, kind: input, shape index: {}]   ;;  %s1059_s4 = inlined_call_operand.vmem [shape: f32[4,1,128], index: 4, kind: input, shape index: {}]   ;;  %s1060_s5 = inlined_call_operand.vmem [shape: bf16[4,128,128], index: 5, kind: input, shape index: {}]   ;;  %s1061_s6 = inlined_call_operand.vmem [shape: f32[4,1,128], index: 6, kind: input, shape index: {}]   ;;  %s1062_s7 = inlined_call_operand.vmem [shape: f32[16,128], index: 7, kind: output, shape index: {}]  }
   0x1   :  { %s12_s26 = sshll.u32 %s1055_s0, 4  ;;  %s13_s26 = int_to_ptr.vmem [resolvable:$true] %s12_s26 }
   0x2   :  { %s860_s27 = scalar_lea.vmem %s13_s26, 16  ;;  %p865_p1 = scmp.lt.s32.totalorder %s13_s26, %s13_s26 }
   0x3   :  { %p861_p0 = scmp.ne.s32.totalorder %s13_s26, %s860_s27  ;;  %p866_p2 = scmp.lt.s32.totalorder %s860_s27, %s860_s27 }
   0x5   :  { %p867_p3 = por %p866_p2, %p865_p1 }
   0x7   :  { %p868_p4 = pnand %p867_p3, %p861_p0 }
   0x9   :  { %871 = shalt.err (!%p868_p4)  }
   0xa   :  { %s898_s28 = smov [#allocation3]  }
   0xb   :  { %15 = dma.vmem_to_smem %s13_s26, 16, %s898_s28, [#allocation2] }
   0xc   :  { %884 = dma.done.wait [#allocation2], 16 }
   0xd   :  { %885 = vsyncadd [#allocation2], 4294967280 }
   0xe   :  { %17 = sfence }
   0xf   :  { %s946_s29 = smov 0   ;;  %s948_s30 = smov 0  }
  0x10   :  { %s950_s8 = smov 0  }
  0x11 LB: > { %s32_s0 = sadd.s32 1, %s892_s30  ;;  %p721_p5 = scmp.ge.s32.totalorder %s896_s8, 1  ;;  %s896_s8 = sphi %s950_s8, %s23_s8   ;;  %s892_s30 = sphi %s948_s30, %s1064_s30   ;;  %s888_s29 = sphi %s946_s29, %s1063_s29  }
  0x12   : > { %p33_p6 = scmp.ge.s32.totalorder %s32_s0, 4  ;;  %p265_p7 = scmp.lt.s32.totalorder %s896_s8, 5 }
  0x14   : > { %s1066_s0 = smov (%p33_p6, %s32_s0), 0  ;;  %p266_p8 = pnand %p721_p5, %p265_p7 }
  0x15   : > { %p317_p9 = scmp.lt.s32.totalorder (!%p266_p8), %s888_s29, 3  ;;  %p724_p10 = scmp.ne.s32.totalorder (!%p266_p8), %s888_s29, 0 }
  0x16   : > { %269 = sbr.rel (%p266_p8) target bundleno = 519 (0x207), region = 44 }
  0x1d   : > { %s968_s9 = scalar_select %p317_p9, %s888_s29, 3 }
  0x1e   : > { %342 = sbr.rel (%p724_p10) target bundleno = 37 (0x25), region = 48  ;;  %v899_v0 = vmov (!%p724_p10), 0.0  }
  0x1f   : > { %s752_s10 = sshll.u32 %s968_s9, 4  ;;  %s328_s13 = scalar_lea.vmem %s1059_s4, %s968_s9  ;;  %343 = vst [vmem:[%s1062_s7] sm:$0xff] (!%p724_p10), %v899_v0  ;;  %344 = vst [vmem:[%s1062_s7 + $0x8] sm:$0xff] (!%p724_p10), %v899_v0 }
  0x20   : > { %s978_s16 = scalar_lea.vmem %s1057_s2, %s752_s10  ;;  %s331_s19 = scalar_lea.vmem %s1061_s6, %s968_s9 }
  0x25 PF: > { %s347_s24 = sld [smem:[#allocation3 + %s888_s29]] }
  0x2b   : > { %p725_p11 = scmp.le.s32.totalorder %s347_s24, 0 }
  0x2c   : > { %s753_s25 = sshll.u32 (!%p725_p11), %s888_s29, 6  ;;  %v900_v1 = vmov (!%p725_p11), 0.0   ;;  %vm901_vm0 = vmmov (!%p725_p11), 0   ;;  %v851_v16 = vld [vmem:[%s1056_s1] sm:$0xff] (!%p725_p11)   ;;  %v902_v20 = vmov (!%p725_p11), 0   ;;  %v595_v21 = vld [vmem:[%s978_s16 + $0x8] sm:$0xff] (!%p725_p11) }
  0x2d   : > { %351 = sbr.rel (%p725_p11) target bundleno = 519 (0x207), region = 52  ;;  %773 = vmatprep.subr.bf16.mxu0 (!%p725_p11), %v900_v1  ;;  %s996_s28 = scalar_lea.vmem (!%p725_p11), %s1058_s3, %s753_s25  ;;  %789 = vmatprep.mubr.msk.bf16.mxu0 (!%p725_p11), %vm901_vm0, %v900_v1  ;;  %v594_v19 = vld [vmem:[%s978_s16] sm:$0xff] (!%p725_p11)  ;;  %v593_v43 = vld [vmem:[%s1062_s7 + $0x8] sm:$0xff] (!%p725_p11) }
  0x2e   : > { %v843_v2 = vld [vmem:[%s996_s28] sm:$0xff] (!%p725_p11)   ;;  %793 = vmatprep.subr.bf16.mxu1 (!%p725_p11), %v900_v1  ;;  %809 = vmatprep.mubr.msk.bf16.mxu1 (!%p725_p11), %vm901_vm0, %v900_v1  ;;  %v844_v3 = vld [vmem:[%s996_s28 + $0x8] sm:$0xff] (!%p725_p11)   ;;  %s1003_s11 = scalar_lea.vmem (!%p725_p11), %s1060_s5, %s753_s25  ;;  %v845_v4 = vld [vmem:[%s996_s28 + $0x10] sm:$0xff] (!%p725_p11)  }
  0x2f   : > { %774 = vmatpush3.bf16.msra.mxu0 (!%p725_p11), %v843_v2  ;;  %v852_v5 = vld [vmem:[%s1003_s11] sm:$0xff] (!%p725_p11)   ;;  %v846_v6 = vld [vmem:[%s996_s28 + $0x18] sm:$0xff] (!%p725_p11)   ;;  %v853_v7 = vld [vmem:[%s1003_s11 + $0x8] sm:$0xff] (!%p725_p11)   ;;  %842 = vset.pattern.permute.xlu0 (!%p725_p11), %v902_v20 }
  0x30   : > { %775 = vmatprep.subr.bf16.mxu0 (!%p725_p11), %v900_v1  ;;  %794 = vmatpush3.bf16.msra.mxu1 (!%p725_p11), %v852_v5  ;;  %v847_v8 = vld [vmem:[%s996_s28 + $0x20] sm:$0xff] (!%p725_p11)   ;;  %v854_v9 = vld [vmem:[%s1003_s11 + $0x10] sm:$0xff] (!%p725_p11)   ;;  %v848_v10 = vld [vmem:[%s996_s28 + $0x28] sm:$0xff] (!%p725_p11)  }
  0x31   : > { %795 = vmatprep.subr.bf16.mxu1 (!%p725_p11), %v900_v1  ;;  %v855_v11 = vld [vmem:[%s1003_s11 + $0x18] sm:$0xff] (!%p725_p11)   ;;  %v849_v12 = vld [vmem:[%s996_s28 + $0x30] sm:$0xff] (!%p725_p11)   ;;  %v856_v13 = vld [vmem:[%s1003_s11 + $0x20] sm:$0xff] (!%p725_p11)   ;;  %598 = vperm.xlu0 (!%p725_p11), %842, %v594_v19  }
  0x32   : > { %v850_v14 = vld [vmem:[%s996_s28 + $0x38] sm:$0xff] (!%p725_p11)   ;;  %v857_v15 = vld [vmem:[%s1003_s11 + $0x28] sm:$0xff] (!%p725_p11)   ;;  %v858_v17 = vld [vmem:[%s1003_s11 + $0x30] sm:$0xff] (!%p725_p11)  }
  0x33   : > { %776 = vmatpush3.bf16.msra.mxu0 (!%p725_p11), %v844_v3  ;;  %v859_v18 = vld [vmem:[%s1003_s11 + $0x38] sm:$0xff] (!%p725_p11)   ;;  %v729_v22 = vld [vmem:[%s328_s13] ss:$0 sm:$0xff] (!%p725_p11) }
  0x34   : > { %777 = vmatprep.subr.bf16.mxu0 %v900_v1  ;;  %796 = vmatpush3.bf16.msra.mxu1 %v853_v7  ;;  %v739_v33 = vld [vmem:[%s331_s19] ss:$0 sm:$0xff] }
  0x35   : > { %797 = vmatprep.subr.bf16.mxu1 %v900_v1  ;;  %603 = vperm.xlu0 %842, %v595_v21   ;;  %v592_v37 = vld [vmem:[%s1062_s7] sm:$0xff] }
  0x37   : > { %778 = vmatpush3.bf16.msra.mxu0 %v845_v4 }
  0x38   : > { %779 = vmatprep.subr.bf16.mxu0 %v900_v1  ;;  %798 = vmatpush3.bf16.msra.mxu1 %v854_v9 }
  0x39   : > { %799 = vmatprep.subr.bf16.mxu1 %v900_v1 }
  0x3b   : > { %780 = vmatpush3.bf16.msra.mxu0 %v846_v6 }
  0x3c   : > { %781 = vmatprep.subr.bf16.mxu0 %v900_v1  ;;  %800 = vmatpush3.bf16.msra.mxu1 %v855_v11 }
  0x3d   : > { %801 = vmatprep.subr.bf16.mxu1 %v900_v1 }
  0x3f   : > { %782 = vmatpush3.bf16.msra.mxu0 %v847_v8 }
  0x40   : > { %783 = vmatprep.subr.bf16.mxu0 %v900_v1  ;;  %802 = vmatpush3.bf16.msra.mxu1 %v856_v13 }
  0x41   : > { %803 = vmatprep.subr.bf16.mxu1 %v900_v1 }
  0x43   : > { %784 = vmatpush3.bf16.msra.mxu0 %v848_v10 }
  0x44   : > { %785 = vmatprep.subr.bf16.mxu0 %v900_v1  ;;  %804 = vmatpush3.bf16.msra.mxu1 %v857_v15 }
  0x45   : > { %805 = vmatprep.subr.bf16.mxu1 %v900_v1 }
  0x47   : > { %786 = vmatpush3.bf16.msra.mxu0 %v849_v12 }
  0x48   : > { %787 = vmatprep.subr.bf16.mxu0 %v900_v1  ;;  %806 = vmatpush3.bf16.msra.mxu1 %v858_v17 }
  0x49   : > { %807 = vmatprep.subr.bf16.mxu1 %v900_v1 }
  0x4b   : > { %788 = vmatpush3.bf16.msra.mxu0 %v850_v14 }
  0x4c   : > { %808 = vmatpush3.bf16.msra.mxu1 %v859_v18 }
  0x4e   : > { %790 = vmatmul.mubr.bf16.vlgmr.msra.gmra.mrb[0].mxu0 %v851_v16 }
  0xb0   : > { %v599_v32 = vpop.permute.xlu0 %598 }
  0xb4   : > { %v604_v42 = vpop.permute.xlu0 %603 }
 0x121   : > { %v486_v23 = vpop.f32.mrb[0].mxu0 }
 0x122   : > { %v487_v24 = vadd.f32 %v729_v22, %v486_v23  ;;  %v791_v25 = vpop.f32.mrb[1].mxu0 }
 0x123   : > { %v489_v26 = vpop.f32.mrb[2].mxu0 }
 0x124   : > { %v490_v27 = vadd.f32 %v729_v22, %v489_v26  ;;  %v792_v28 = vpop.f32.mrb[3].mxu0  ;;  %v493_v29 = vmax.f32 %v487_v24, 0.0 }
 0x126   : > { %v494_v30 = vmax.f32 %v490_v27, 0.0 }
 0x128   : > { %v495_v31 = vpack.c.bf16 %v494_v30, %v493_v29 }
 0x12a   : > { %810 = vmatmul.mubr.bf16.vlgmr.msra.gmra.mrb[0].mxu1 %v495_v31 }
 0x1fd   : > { %v585_v34 = vpop.f32.mrb[0].mxu1 }
 0x1fe   : > { %v586_v35 = vadd.f32 %v739_v33, %v585_v34  ;;  %v811_v36 = vpop.f32.mrb[1].mxu1 }
 0x1ff   : > { %v588_v38 = vpop.f32.mrb[2].mxu1 }
 0x200   : > { %v606_v39 = vmul.f32 %v599_v32, %v586_v35  ;;  %v589_v40 = vadd.f32 %v739_v33, %v588_v38  ;;  %v812_v41 = vpop.f32.mrb[3].mxu1 }
 0x202   : > { %v608_v44 = vadd.f32 %v606_v39, %v592_v37  ;;  %v607_v45 = vmul.f32 %v604_v42, %v589_v40 }
 0x204   : > { %610 = vst [vmem:[%s1062_s7] sm:$0xff] %v608_v44  ;;  %v609_v46 = vadd.f32 %v607_v45, %v593_v43 }
 0x206   : > { %611 = vst [vmem:[%s1062_s7 + $0x8] sm:$0xff] %v609_v46 }
 0x207 PF: > { %s23_s8 = sadd.s32 1, %s896_s8   ;;  %s1063_s29 = smov %s892_s30 }
 0x208   : > { %p20_p12 = scmp.ge.s32.totalorder %s23_s8, 6   ;;  %s1064_s30 = smov %s1066_s0 }
 0x20a   :  { %22 = sbr.rel (!%p20_p12) target bundleno = 17 (0x11), region = 93 }

</bundles_post_ra>
